<compile_context>
chip_gen: v5e
topology: v5e:2x2
jax: 0.10.0
libtpu: 0.0.40
codegen_flags: <defaults>
</compile_context>

<pallas_src>
import functools

import jax
import jax.numpy as jnp
from jax.experimental import pallas as pl
from jax.experimental.pallas import tpu as pltpu


# --------------------------------------------------------------------------
# Stage 1: fused avg/max pooling over the spatial axis, rows = B*C
# --------------------------------------------------------------------------

def _pool_single_kernel(x_ref, o_ref, *, inv_hw):
    """Whole spatial extent fits on lanes: one shot per row block."""
    x = x_ref[...].astype(jnp.float32)                      # (TR, HW)
    avg = jnp.sum(x, axis=-1, keepdims=True) * inv_hw       # (TR, 1)
    mx = jnp.max(x, axis=-1, keepdims=True)                 # (TR, 1)
    o_ref[...] = jnp.concatenate([avg, mx], axis=-1).astype(o_ref.dtype)


def _pool_tiled_kernel(x_ref, o_ref, sum_ref, max_ref, *, hw, t_hw, need_mask, inv_hw):
    """Spatial axis tiled in multiples of 128 lanes; last tile masked."""
    t = pl.program_id(1)
    nt = pl.num_programs(1)

    @pl.when(t == 0)
    def _init():
        sum_ref[...] = jnp.zeros(sum_ref.shape, sum_ref.dtype)
        max_ref[...] = jnp.full(max_ref.shape, -jnp.inf, max_ref.dtype)

    x = x_ref[...].astype(jnp.float32)                      # (TR, T_hw)
    if need_mask:
        col = jax.lax.broadcasted_iota(jnp.int32, x.shape, 1) + t * t_hw
        valid = col < hw
        xs = jnp.where(valid, x, 0.0)
        xm = jnp.where(valid, x, -jnp.inf)
    else:
        xs = x
        xm = x

    sum_ref[...] += jnp.sum(xs, axis=-1, keepdims=True)
    max_ref[...] = jnp.maximum(max_ref[...], jnp.max(xm, axis=-1, keepdims=True))

    @pl.when(t == nt - 1)
    def _finalize():
        avg = sum_ref[...] * inv_hw
        o_ref[...] = jnp.concatenate([avg, max_ref[...]], axis=-1).astype(o_ref.dtype)


def _round_up(x, m):
    return (x + m - 1) // m * m


def _vmem_capacity_bytes():
    try:
        info = pltpu.get_tpu_info()
        cap = getattr(info, "vmem_capacity_bytes", None)
        if cap:
            return int(cap)
    except Exception:
        pass
    return 64 << 20   # conservative default (v7x per-core VMEM)


def _pick_pool_tiles(r_pad, hw, itemsize, budget):
    """Choose (t_r, t_hw). t_hw == hw means the whole spatial extent sits on lanes."""
    if hw * 8 * itemsize <= budget:
        t_hw = hw   # full-extent lane dim: no (8,128) divisibility needed
        max_rows = max(8, (budget // max(1, hw * itemsize)) // 8 * 8)
        # Aim for >= 4 row blocks: enables pipelining and keeps both v7x TCs busy.
        target_rows = _round_up(max(1, pl.cdiv(r_pad, 4)), 8)
        t_r = max(8, min(r_pad, max_rows, target_rows))
        return t_r, t_hw
    # Large spatial extent: tile lanes in multiples of 128 (masked last tile).
    t_r = 8
    max_lanes = max(128, (budget // (t_r * itemsize)) // 128 * 128)
    t_hw = min(_round_up(hw, 128), max_lanes)
    return t_r, t_hw


def _channel_pool(x3, budget_bytes=None):
    """x3: (R, HW) view of NCHW. Returns (R, 2) f32: [:,0]=avg, [:,1]=max."""
    R, HW = x3.shape
    itemsize = jnp.dtype(x3.dtype).itemsize
    vmem_cap = _vmem_capacity_bytes()
    if budget_bytes is None:
        # Generation-aware per-block budget (v7x has half the VMEM of v5e/v6e).
        budget_bytes = (4 << 20) if vmem_cap <= (64 << 20) else (8 << 20)

    r_pad = _round_up(R, 8)
    t_r, t_hw = _pick_pool_tiles(r_pad, HW, itemsize, budget_bytes)
    n_r = pl.cdiv(R, t_r)
    inv_hw = 1.0 / HW

    block_bytes = t_r * t_hw * itemsize
    out_block_bytes = t_r * 2 * 4
    scratch_bytes = 2 * t_r * 4

    if t_hw == HW:
        grid = (n_r,)
        kernel = functools.partial(_pool_single_kernel, inv_hw=inv_hw)
        in_specs = [pl.BlockSpec((t_r, HW), lambda r: (r, 0))]
        out_specs = pl.BlockSpec((t_r, 2), lambda r: (r, 0))
        scratch_shapes = []
        dim_sem = ("parallel",)
    else:
        n_hw = pl.cdiv(HW, t_hw)
        grid = (n_r, n_hw)                                  # reduction axis last
        kernel = functools.partial(
            _pool_tiled_kernel, hw=HW, t_hw=t_hw,
            need_mask=(HW % t_hw != 0), inv_hw=inv_hw)
        in_specs = [pl.BlockSpec((t_r, t_hw), lambda r, t: (r, t))]
        out_specs = pl.BlockSpec((t_r, 2), lambda r, t: (r, 0))
        scratch_shapes = [pltpu.VMEM((t_r, 1), jnp.float32),
                          pltpu.VMEM((t_r, 1), jnp.float32)]
        dim_sem = ("parallel", "arbitrary")

    # Double-buffered input + output blocks + scratch + headroom, chip-capped.
    vmem_limit = 2 * block_bytes + 2 * out_block_bytes + scratch_bytes + (2 << 20)
    vmem_limit = int(min(max(vmem_limit, 4 << 20), vmem_cap * 3 // 4))

    cost = pl.CostEstimate(
        flops=int(2 * R * HW),
        transcendentals=0,
        bytes_accessed=int(R * HW * itemsize + R * 2 * 4),
    )

    return pl.pallas_call(
        kernel,
        out_shape=jax.ShapeDtypeStruct((R, 2), jnp.float32),
        grid=grid,
        in_specs=in_specs,
        out_specs=out_specs,
        scratch_shapes=scratch_shapes,
        compiler_params=pltpu.CompilerParams(
            dimension_semantics=dim_sem,
            vmem_limit_bytes=vmem_limit,
        ),
        cost_estimate=cost,
    )(x3)


# --------------------------------------------------------------------------
# Stage 2: shared 1x1-conv MLP + sigmoid over all images' pooled vectors
# --------------------------------------------------------------------------

def _mlp_kernel(pa_ref, pm_ref, w1t_ref, w2t_ref, o_ref):
    # pa_ref/pm_ref: (B, C) avg / max pooled vectors (f32)
    # w1t_ref: (C, Cr)   Conv2d(C, C//r, 1).weight, squeezed & transposed
    # w2t_ref: (Cr, C)   Conv2d(C//r, C, 1).weight, squeezed & transposed
    # o_ref:   (B, C)    sigmoid channel attention (C lane-dense)
    w1t = w1t_ref[...].astype(jnp.float32)
    w2t = w2t_ref[...].astype(jnp.float32)

    def mlp(v):
        h = jnp.maximum(jnp.dot(v, w1t, preferred_element_type=jnp.float32), 0.0)
        return jnp.dot(h, w2t, preferred_element_type=jnp.float32)

    attn = jax.nn.sigmoid(mlp(pa_ref[...].astype(jnp.float32))
                          + mlp(pm_ref[...].astype(jnp.float32)))
    o_ref[...] = attn.astype(o_ref.dtype)


def _mlp_attention(p_avg, p_max, w1, w2, out_dtype):
    B, C = p_avg.shape
    Cr = w1.shape[0]
    w1t = jnp.transpose(w1)          # (C, Cr) — tiny wrapper-side layout plumbing
    w2t = jnp.transpose(w2)          # (Cr, C)
    witem = jnp.dtype(w1.dtype).itemsize

    bytes_needed = 4 * (2 * B * C + B * C) + 2 * C * Cr * witem
    vmem_cap = _vmem_capacity_bytes()
    vmem_limit = int(min(max(2 * bytes_needed + (2 << 20), 4 << 20), vmem_cap * 3 // 4))

    cost = pl.CostEstimate(
        flops=int(8 * B * C * Cr),
        transcendentals=int(B * C),
        bytes_accessed=int(bytes_needed),
    )

    return pl.pallas_call(
        _mlp_kernel,
        out_shape=jax.ShapeDtypeStruct((B, C), out_dtype),
        grid=(1,),
        in_specs=[
            pl.BlockSpec((B, C), lambda i: (0, 0)),
            pl.BlockSpec((B, C), lambda i: (0, 0)),
            pl.BlockSpec((C, Cr), lambda i: (0, 0)),
            pl.BlockSpec((Cr, C), lambda i: (0, 0)),
        ],
        out_specs=pl.BlockSpec((B, C), lambda i: (0, 0)),
        compiler_params=pltpu.CompilerParams(vmem_limit_bytes=vmem_limit),
        cost_estimate=cost,
    )(p_avg, p_max, w1t, w2t)


# --------------------------------------------------------------------------
# Forward wrapper
# --------------------------------------------------------------------------

@functools.partial(jax.jit, static_argnames=("pool_block_budget_bytes",))
def channel_attention_forward(x, w1, w2, *, pool_block_budget_bytes=None):
    """x: (B, C, H, W) (f32 or bf16); w1: (C//r, C); w2: (C, C//r).
    Returns (B, C, 1, 1) channel attention in x.dtype."""
    B, C, H, W = x.shape
    HW = H * W
    x3 = x.reshape(B * C, HW)                 # free metadata reshape of contiguous NCHW
    pooled = _channel_pool(x3, budget_bytes=pool_block_budget_bytes)   # (B*C, 2) f32
    pooled = pooled.reshape(B, C, 2)
    attn = _mlp_attention(pooled[:, :, 0], pooled[:, :, 1], w1, w2, x.dtype)  # (B, C)
    return attn.reshape(B, C, 1, 1)


# ------------------------------- pure-JAX reference --------------------------------

def channel_attention_reference(x, w1, w2):
    xf = x.astype(jnp.float32)
    avg = jnp.mean(xf, axis=(2, 3), keepdims=True)
    mx = jnp.max(xf, axis=(2, 3), keepdims=True)

    def mlp(v):
        h = jnp.einsum('rc,bcij->brij', w1, v)
        h = jnp.maximum(h, 0.0)
        return jnp.einsum('cr,brij->bcij', w2, h)

    return jax.nn.sigmoid(mlp(avg) + mlp(mx))


if __name__ == "__main__":
    def run_case(B, C, H, W, ratio, dtype, budget=None, atol=1e-5, rtol=1e-5):
        Cr = max(1, C // ratio)
        key = jax.random.PRNGKey(0)
        kx, k1, k2 = jax.random.split(key, 3)
        x = jax.random.normal(kx, (B, C, H, W), dtype=jnp.float32).astype(dtype)
        w1 = 0.3 * jax.random.normal(k1, (Cr, C), dtype=jnp.float32)
        w2 = 0.3 * jax.random.normal(k2, (C, Cr), dtype=jnp.float32)

        out = jax.block_until_ready(
            channel_attention_forward(x, w1, w2, pool_block_budget_bytes=budget))
        ref = jax.block_until_ready(channel_attention_reference(x, w1, w2))

        assert out.shape == (B, C, 1, 1), out.shape
        outf = out.astype(jnp.float32)
        max_err = float(jnp.max(jnp.abs(outf - ref)))
        assert jnp.allclose(outf, ref, atol=atol, rtol=rtol), \
            f"case {(B, C, H, W, ratio, str(dtype))}: max abs err {max_err}"

    # Standard small case.
    run_case(2, 16, 16, 16, 8, jnp.float32)
    # Odd spatial extent (HW=100, not a multiple of 128) + partial row tile (B*C=20).
    run_case(1, 20, 10, 10, 4, jnp.float32)
    # Force the tiled + masked-last-lane-tile path with a tiny per-block budget.
    run_case(2, 16, 20, 20, 8, jnp.float32, budget=8192)
    # bf16 activations (half the HBM traffic); accumulation stays f32 in-kernel.
    run_case(2, 32, 12, 12, 8, jnp.bfloat16, atol=2e-2, rtol=2e-2)

    print("KERNEL_OK")
</pallas_src>

<mosaic_0001>
module attributes {stable_mosaic.version = 11 : i64} {
  func.func @_pool_single_kernel(%arg0: i32, %arg1: memref<8x256xf32, #tpu.memory_space<vmem>>, %arg2: memref<8x2xf32, #tpu.memory_space<vmem>>) attributes {dimension_semantics = [#tpu.dimension_semantics<parallel>], iteration_bounds = array<i64: 4>, scalar_prefetch = 0 : i64, scratch_operands = 0 : i64, tpu.core_type = #tpu.core_type<tc>, window_params = [{transform_indices = @transform_0, window_bounds = array<i64: 8, 256>}, {transform_indices = @transform_1, window_bounds = array<i64: 8, 2>}]} {
    %c0 = arith.constant 0 : index
    %c0_0 = arith.constant 0 : index
    %0 = vector.load %arg1[%c0, %c0_0] : memref<8x256xf32, #tpu.memory_space<vmem>>, vector<8x256xf32>
    %cst = arith.constant dense<0.000000e+00> : vector<8xf32>
    %1 = vector.multi_reduction <add>, %0, %cst [1] : vector<8x256xf32> to vector<8xf32>
    %2 = vector.shape_cast %1 : vector<8xf32> to vector<8x1xf32>
    %cst_1 = arith.constant 3.906250e-03 : f32
    %3 = vector.broadcast %cst_1 : f32 to vector<8x1xf32>
    %4 = arith.mulf %2, %3 : vector<8x1xf32>
    %cst_2 = arith.constant dense<0xFF800000> : vector<8xf32>
    %5 = vector.multi_reduction <maximumf>, %0, %cst_2 [1] : vector<8x256xf32> to vector<8xf32>
    %6 = vector.shape_cast %5 : vector<8xf32> to vector<8x1xf32>
    %7 = tpu.concatenate %4, %6 in 1 : vector<8x1xf32>, vector<8x1xf32> -> vector<8x2xf32>
    %c0_3 = arith.constant 0 : index
    %c0_4 = arith.constant 0 : index
    %8 = vector.load %arg2[%c0_3, %c0_4] : memref<8x2xf32, #tpu.memory_space<vmem>>, vector<8x2xf32>
    tpu.vector_store %arg2[%c0_3, %c0_4], %7 {strides = array<i32>} : memref<8x2xf32, #tpu.memory_space<vmem>>, vector<8x2xf32>,
    return
  }
  func.func @transform_0(%arg0: i32) -> (i32, i32) {
    %c0_i32 = arith.constant 0 : i32
    %c0_i32_0 = arith.constant 0 : i32
    return %arg0, %c0_i32 : i32, i32
  }
  func.func @transform_1(%arg0: i32) -> (i32, i32) {
    %c0_i32 = arith.constant 0 : i32
    %c0_i32_0 = arith.constant 0 : i32
    return %arg0, %c0_i32 : i32, i32
  }
}

module attributes {stable_mosaic.version = 11 : i64} {
  func.func @_mlp_kernel(%arg0: i32, %arg1: memref<2x16xf32, #tpu.memory_space<vmem>>, %arg2: memref<2x16xf32, #tpu.memory_space<vmem>>, %arg3: memref<16x2xf32, #tpu.memory_space<vmem>>, %arg4: memref<2x16xf32, #tpu.memory_space<vmem>>, %arg5: memref<2x16xf32, #tpu.memory_space<vmem>>) attributes {dimension_semantics = [#tpu.dimension_semantics<arbitrary>], iteration_bounds = array<i64: 1>, scalar_prefetch = 0 : i64, scratch_operands = 0 : i64, tpu.core_type = #tpu.core_type<tc>, window_params = [{pipeline_mode = #tpu.pipeline_mode<synchronous>, transform_indices = @transform_0, window_bounds = array<i64: 2, 16>}, {pipeline_mode = #tpu.pipeline_mode<synchronous>, transform_indices = @transform_1, window_bounds = array<i64: 2, 16>}, {pipeline_mode = #tpu.pipeline_mode<synchronous>, transform_indices = @transform_2, window_bounds = array<i64: 16, 2>}, {pipeline_mode = #tpu.pipeline_mode<synchronous>, transform_indices = @transform_3, window_bounds = array<i64: 2, 16>}, {pipeline_mode = #tpu.pipeline_mode<synchronous>, transform_indices = @transform_4, window_bounds = array<i64: 2, 16>}]} {
    %c0 = arith.constant 0 : index
    %c0_0 = arith.constant 0 : index
    %0 = vector.load %arg3[%c0, %c0_0] : memref<16x2xf32, #tpu.memory_space<vmem>>, vector<16x2xf32>
    %c0_1 = arith.constant 0 : index
    %c0_2 = arith.constant 0 : index
    %1 = vector.load %arg4[%c0_1, %c0_2] : memref<2x16xf32, #tpu.memory_space<vmem>>, vector<2x16xf32>
    %c0_3 = arith.constant 0 : index
    %c0_4 = arith.constant 0 : index
    %2 = vector.load %arg1[%c0_3, %c0_4] : memref<2x16xf32, #tpu.memory_space<vmem>>, vector<2x16xf32>
    %cst = arith.constant dense<0.000000e+00> : vector<2x2xf32>
    %3 = tpu.matmul %2, %0, %cst {dimension_numbers = #tpu.dot_dimension_numbers<[1], [0], [0], [1], [0, 0, 1, 1], [], []>} : vector<2x16xf32>, vector<16x2xf32>, vector<2x2xf32> -> vector<2x2xf32>
    %cst_5 = arith.constant 0.000000e+00 : f32
    %4 = vector.broadcast %cst_5 : f32 to vector<2x2xf32>
    %5 = arith.maximumf %3, %4 : vector<2x2xf32>
    %cst_6 = arith.constant dense<0.000000e+00> : vector<2x16xf32>
    %6 = tpu.matmul %5, %1, %cst_6 {dimension_numbers = #tpu.dot_dimension_numbers<[1], [0], [0], [1], [0, 0, 1, 1], [], []>} : vector<2x2xf32>, vector<2x16xf32>, vector<2x16xf32> -> vector<2x16xf32>
    %c0_7 = arith.constant 0 : index
    %c0_8 = arith.constant 0 : index
    %7 = vector.load %arg2[%c0_7, %c0_8] : memref<2x16xf32, #tpu.memory_space<vmem>>, vector<2x16xf32>
    %cst_9 = arith.constant dense<0.000000e+00> : vector<2x2xf32>
    %8 = tpu.matmul %7, %0, %cst_9 {dimension_numbers = #tpu.dot_dimension_numbers<[1], [0], [0], [1], [0, 0, 1, 1], [], []>} : vector<2x16xf32>, vector<16x2xf32>, vector<2x2xf32> -> vector<2x2xf32>
    %cst_10 = arith.constant 0.000000e+00 : f32
    %9 = vector.broadcast %cst_10 : f32 to vector<2x2xf32>
    %10 = arith.maximumf %8, %9 : vector<2x2xf32>
    %cst_11 = arith.constant dense<0.000000e+00> : vector<2x16xf32>
    %11 = tpu.matmul %10, %1, %cst_11 {dimension_numbers = #tpu.dot_dimension_numbers<[1], [0], [0], [1], [0, 0, 1, 1], [], []>} : vector<2x2xf32>, vector<2x16xf32>, vector<2x16xf32> -> vector<2x16xf32>
    %12 = arith.addf %6, %11 : vector<2x16xf32>
    %13 = arith.negf %12 : vector<2x16xf32>
    %14 = math.exp %13 : vector<2x16xf32>
    %cst_12 = arith.constant 1.000000e+00 : f32
    %15 = vector.broadcast %cst_12 : f32 to vector<2x16xf32>
    %16 = arith.addf %15, %14 : vector<2x16xf32>
    %17 = arith.divf %15, %16 : vector<2x16xf32>
    %c0_13 = arith.constant 0 : index
    %c0_14 = arith.constant 0 : index
    %18 = vector.load %arg5[%c0_13, %c0_14] : memref<2x16xf32, #tpu.memory_space<vmem>>, vector<2x16xf32>
    tpu.vector_store %arg5[%c0_13, %c0_14], %17 {strides = array<i32>} : memref<2x16xf32, #tpu.memory_space<vmem>>, vector<2x16xf32>,
    return
  }
  func.func @transform_0(%arg0: i32) -> (i32, i32) {
    %c0_i32 = arith.constant 0 : i32
    %c0_i32_0 = arith.constant 0 : i32
    %c0_i32_1 = arith.constant 0 : i32
    return %c0_i32, %c0_i32_0 : i32, i32
  }
  func.func @transform_1(%arg0: i32) -> (i32, i32) {
    %c0_i32 = arith.constant 0 : i32
    %c0_i32_0 = arith.constant 0 : i32
    %c0_i32_1 = arith.constant 0 : i32
    return %c0_i32, %c0_i32_0 : i32, i32
  }
  func.func @transform_2(%arg0: i32) -> (i32, i32) {
    %c0_i32 = arith.constant 0 : i32
    %c0_i32_0 = arith.constant 0 : i32
    %c0_i32_1 = arith.constant 0 : i32
    return %c0_i32, %c0_i32_0 : i32, i32
  }
  func.func @transform_3(%arg0: i32) -> (i32, i32) {
    %c0_i32 = arith.constant 0 : i32
    %c0_i32_0 = arith.constant 0 : i32
    %c0_i32_1 = arith.constant 0 : i32
    return %c0_i32, %c0_i32_0 : i32, i32
  }
  func.func @transform_4(%arg0: i32) -> (i32, i32) {
    %c0_i32 = arith.constant 0 : i32
    %c0_i32_0 = arith.constant 0 : i32
    %c0_i32_1 = arith.constant 0 : i32
    return %c0_i32, %c0_i32_0 : i32, i32
  }
}

</mosaic_0001>

<bundles_post_ra>
// kernel: channel_attention_forward.2
= control target key start
LH: loop header
LB: loop body
LE: loop exit
PB: predicated region body
PF: predicated region fallthrough
CT: control target
= control target key end

     0   :  { %s218_s6 = smov 0   ;;  %s229_s0 = inlined_call_operand.vmem [shape: f32[32,256], index: 0, kind: input, shape index: {}]   ;;  %s230_s1 = inlined_call_operand.vmem [shape: f32[32,2], index: 1, kind: output, shape index: {}]  }
   0x1 LB: > { %s181_s7 = sadd.s32 4294967295, %s206_s6   ;;  %p185_p0 = scmp.ge.s32.totalorder %s206_s6, 1  ;;  %s206_s6 = sphi %s218_s6, %s11_s6  }
   0x2   : > { %p87_p1 = scmp.lt.s32.totalorder %s206_s6, 5 }
   0x4   : > { %p88_p2 = pnand %p185_p0, %p87_p1 }
   0x5   : > { %p106_p3 = scmp.lt.s32.totalorder (!%p88_p2), %s181_s7, 3 }
   0x6   : > { %91 = sbr.rel (%p88_p2) target bundleno = 143 (0x8f), region = 24 }
   0xb   : > { %s232_s7 = smov (!%p106_p3, %s181_s7), 3  ;;  %vm124_vm0 = vcmask 7168   ;;  %vm126_vm1 = vcmask 15360  }
   0xc   : > { %s191_s8 = sshll.u32 %s232_s7, 4  ;;  %s188_s12 = sshll.u32 %s232_s7, 3 }
   0xd   : > { %s110_s11 = scalar_lea.vmem %s229_s0, %s191_s8  ;;  %s114_s15 = scalar_lea.vmem %s230_s1, %s188_s12 }
   0xe   : > { %v115_v0 = vld [vmem:[%s110_s11] sm:$0xff]  ;;  %v116_v1 = vld [vmem:[%s110_s11 + $0x8] sm:$0xff] }
   0xf   : > { %v117_v2 = vadd.f32 %v116_v1, %v115_v0  ;;  %v121_v3 = vmax.f32 %v115_v0, %v116_v1 }
  0x11   : > { %118 = vadd.xlane.f32.xlu0 %v117_v2 }
  0x19   : > { %122 = vmax.xlane.f32.xlu0 %v121_v3 }
  0x84   : > { %v119_v4 = vpop.xlane.xlu0 %118 }
  0x85   : > { %v120_v5 = vmul.f32 0.00390625, %v119_v4 }
  0x8c   : > { %v123_v6 = vpop.xlane.xlu0 %122 }
  0x8d   : > { %v125_v7 = vsel %vm124_vm0, %v120_v5, %v123_v6 }
  0x8e   : > { %127 = vst.msk [vmem:[%s114_s15] sm:$0xff] %vm126_vm1, %v125_v7 }
  0x8f PF: > { %s11_s6 = sadd.s32 1, %s206_s6  }
  0x90   : > { %p8_p4 = scmp.ge.s32.totalorder %s11_s6, 6  }
  0x92   :  { %10 = sbr.rel (!%p8_p4) target bundleno = 1 (0x1), region = 54 }

// kernel: channel_attention_forward.3
= control target key start
LH: loop header
LB: loop body
LE: loop exit
PB: predicated region body
PF: predicated region fallthrough
CT: control target
= control target key end

     0   :  { %vm22_vm0 = vcmask 130048   ;;  %s242_s0 = inlined_call_operand.vmem [shape: f32[2,16], index: 0, kind: input, shape index: {}]   ;;  %s243_s1 = inlined_call_operand.vmem [shape: f32[2,16], index: 1, kind: input, shape index: {}]   ;;  %s244_s2 = inlined_call_operand.vmem [shape: f32[16,2], index: 2, kind: input, shape index: {}]   ;;  %s245_s3 = inlined_call_operand.vmem [shape: f32[2,16], index: 3, kind: input, shape index: {}]   ;;  %s246_s4 = inlined_call_operand.hbm [shape: f32[2,16], index: 4, kind: output, shape index: {}]  }
   0x1   :  { %v19_v0 = vld [vmem:[%s244_s2 + $0x8] sm:$0xff]  ;;  %v18_v1 = vld [vmem:[%s244_s2] sm:$0xff] }
   0x2   :  { %v21_v2 = vld [vmem:[%s242_s0] sm:$0x3]  ;;  %40 = vmatpush.msra.mxu0 %v19_v0  ;;  %65 = vmatpush.msra.mxu1 %v19_v0 }
   0x3   :  { %v47_v3 = vld [vmem:[%s243_s1] sm:$0x3] }
   0x4   :  { %9 = vsyncpa [#allocation3], 0  ;;  %41 = vmatpush.msra.mxu0 %v18_v1  ;;  %66 = vmatpush.msra.mxu1 %v18_v1  ;;  %v20_v4 = vld [vmem:[%s245_s3] sm:$0x3]  ;;  %vm76_vm1 = vcmask 1041408   ;;  %vm72_vm2 = vcmask 15360  }
   0x5   :  { %160 = vmatmul.msk.f32.vlgmr.msra.gmra.mxu0 %vm22_vm0, %v21_v2  ;;  %161 = vmatmul.msk.f32.vlgmr.msra.gmra.mxu1 %vm22_vm0, %v47_v3  ;;  %s198_s0 = smov [#allocation2]   ;;  %s151_s25 = sshll.u32 %s246_s4, 4  ;;  %vm142_vm6 = vcmask 123904   ;;  %s152_s25 = int_to_ptr.hbm [resolvable:$true] %s151_s25 }
   0x6   :  { %162 = vmatpush.msk.msra.mxu2 %vm76_vm1, %v20_v4  ;;  %164 = vmatpush.msk.msra.mxu3 %vm76_vm1, %v20_v4  ;;  %s149_s1 = sshll.u32 %s198_s0, 4  ;;  %s150_s1 = int_to_ptr.vmem [resolvable:$true] %s149_s1 }
  0x82   :  { %v43_v5 = vpop.f32.mrf.mxu0  ;;  %v68_v6 = vpop.f32.mrf.mxu1 }
  0x83   :  { %v46_v7 = vmax.f32 %v43_v5, 0.0  ;;  %v71_v8 = vmax.f32 %v68_v6, 0.0 }
  0x85   :  { %163 = vmatmul.msk.f32.vlgmr.msra.gmra.mxu2 %vm72_vm2, %v71_v8  ;;  %165 = vmatmul.msk.f32.vlgmr.msra.gmra.mxu3 %vm72_vm2, %v46_v7 }
 0x108   :  { %v97_v9 = vpop.f32.mrf.mxu2  ;;  %v120_v10 = vpop.f32.mrf.mxu3 }
 0x109   :  { %v121_v11 = vadd.f32 %v120_v10, %v97_v9 }
 0x10b   :  { %v166_v12 = vmul.f32 -1.442695, %v121_v11 }
 0x10d   :  { %168 = vpow2.f32 %v166_v12 }
 0x113   :  { %v169_v13 = vpop.eup %168 }
 0x114   :  { %v126_v14 = vadd.f32 1.0, %v169_v13 }
 0x116   :  { %170 = vrcp.f32 %v126_v14  ;;  %v138_v18 = vand.u32 2147483648, %v126_v14  ;;  %v136_v20 = vand.u32 2147483647, %v126_v14  ;;  %vm132_vm4 = vweird.f32 %v126_v14 }
 0x118   :  { %v139_v22 = vor.u32 1.1754944e-38, %v138_v18  ;;  %vm137_vm7 = vcmp.eq.f32.partialorder %v136_v20, 8.507059e+37 }
 0x11c   :  { %v171_v15 = vpop.eup %170 }
 0x11d   :  { %v128_v16 = vmul.f32 %v171_v15, %v126_v14  ;;  %vm133_vm3 = vweird.f32 %v171_v15 }
 0x11e   :  { %vm134_vm5 = vmor %vm132_vm4, %vm133_vm3 }
 0x11f   :  { %v129_v17 = vsub.f32 1.0, %v128_v16 }
 0x121   :  { %v130_v19 = vmul.f32 %v171_v15, %v129_v17 }
 0x123   :  { %v131_v21 = vadd.f32 %v171_v15, %v130_v19 }
 0x125   :  { %v135_v23 = vsel %vm134_vm5, %v171_v15, %v131_v21 }
 0x126   :  { %v140_v24 = vsel %vm137_vm7, %v139_v22, %v135_v23 }
 0x127   :  { %143 = vst.msk [vmem:[#allocation2] sm:$0x3] %vm142_vm6, %v140_v24 }
 0x128   :  { %154 = dma.vmem_to_hbm [thread:$0]  %s150_s1, 32, %s152_s25, [#allocation3]  }
 0x129   :  { %196 = dma.done.wait [#allocation3], 32  }
 0x12a   :  { %197 = vsyncadd [#allocation3], 4294967264 }
 0x12b   :  { %159 = vsyncpa [#allocation3], 1 }

</bundles_post_ra>
